<compile_context>
chip_gen: v7x
topology: tpu7x:2x2x1
jax: 0.10.0
libtpu: 0.0.40
codegen_flags: <defaults>
</compile_context>

<pallas_src>
from functools import partial

import jax
import jax.numpy as jnp
from jax.experimental import pallas as pl
from jax.experimental.pallas import tpu as pltpu


# ----------------------------------------------------------------------------
# Kernels
# ----------------------------------------------------------------------------

def _rsoftmax_kernel(x_ref, o_ref, *, radix, cardinality, r, row_chunk):
    """Softmax over the radix axis with the (card, radix) -> (radix, card)
    transpose folded into static output lane offsets.

    x_ref, o_ref: (b_tile, M) with M = cardinality * radix * r.
      input  lanes ordered (cardinality, radix, r)  [original NCHW order]
      output lanes ordered (radix, cardinality, r)  [PyTorch rSoftMax order]

    The block is processed in `row_chunk`-row sublane chunks so the per-group
    live temporaries fit in the vector register file (no VMEM spills).
    """
    b_tile = x_ref.shape[0]
    n_chunks = b_tile // row_chunk

    def process_rows(rows):
        for c in range(cardinality):                      # static unroll (small)
            in_base = c * radix * r
            xs = [
                x_ref[rows, pl.ds(in_base + k * r, r)].astype(jnp.float32)
                for k in range(radix)
            ]
            # Unrolled elementwise max / sum over radix (no XLU sublane reduce).
            m = xs[0]
            for k in range(1, radix):
                m = jnp.maximum(m, xs[k])
            es = [jnp.exp(v - m) for v in xs]
            s = es[0]
            for k in range(1, radix):
                s = s + es[k]
            inv = 1.0 / s          # exact divide: mem-bound, exactness is free
            for k in range(radix):
                out_base = k * cardinality * r + c * r
                o_ref[rows, pl.ds(out_base, r)] = (es[k] * inv).astype(o_ref.dtype)

    if n_chunks <= 1:
        process_rows(pl.ds(0, b_tile))
    else:
        @pl.loop(0, n_chunks)
        def _(i):
            row_off = pl.multiple_of(i * row_chunk, 8)
            process_rows(pl.ds(row_off, row_chunk))


def _sigmoid_kernel(x_ref, o_ref, *, row_chunk):
    """Elementwise sigmoid (radix == 1 path), streamed in row chunks."""
    b_tile = x_ref.shape[0]
    n_chunks = b_tile // row_chunk

    def process_rows(rows):
        v = x_ref[rows, :].astype(jnp.float32)
        o_ref[rows, :] = jax.nn.sigmoid(v).astype(o_ref.dtype)

    if n_chunks <= 1:
        process_rows(pl.ds(0, b_tile))
    else:
        @pl.loop(0, n_chunks)
        def _(i):
            row_off = pl.multiple_of(i * row_chunk, 8)
            process_rows(pl.ds(row_off, row_chunk))


# ----------------------------------------------------------------------------
# Tiling heuristics
# ----------------------------------------------------------------------------

def _pick_batch_tile(B, M, itemsize, target_bytes=2 << 20, max_block_bytes=6 << 20):
    """Rows per block.

    - ~2 MiB blocks (per-step overhead ~0.35 us; bigger blocks -> closer to
      HBM roofline), no artificial 512-row cap.
    - 4x block (double-buffered in+out) kept under ~24 MiB so v7x's 64 MiB
      VMEM (32 MiB scoped default) is never at risk.
    - When the batch permits, force >= 2 grid steps so v7x can shard the
      parallel axis over both TensorCores.
    """
    row_bytes = max(1, M * itemsize)
    if B <= 8:
        return B                                   # can't subdivide below sublanes
    rows = target_bytes // row_bytes
    rows = max(8, min(B, rows))
    rows -= rows % 8
    max_rows = max(8, (max_block_bytes // row_bytes) // 8 * 8)
    rows = min(rows, max_rows)
    if rows >= B:                                  # single-step grid -> split in two
        rows = max(8, (B // 2) // 8 * 8)
    return int(rows)


def _pick_row_chunk(b_tile, lane_width, live_arrays, vreg_budget=40):
    """Largest multiple-of-8 divisor of b_tile keeping the in-kernel live
    working set (live_arrays temporaries of (row_chunk, lane_width) f32)
    within ~vreg_budget vregs."""
    if b_tile <= 8:
        return b_tile
    lane_vregs = max(1, -(-lane_width // 128))     # ceil(lane_width / 128)
    max_rows = (vreg_budget * 8) // max(1, live_arrays * lane_vregs)
    max_rows = max(8, max_rows - max_rows % 8)
    chunk = min(b_tile, max_rows)
    chunk -= chunk % 8
    chunk = max(8, chunk)
    while b_tile % chunk:                          # b_tile is a multiple of 8
        chunk -= 8
    return int(chunk)


# ----------------------------------------------------------------------------
# Wrapper (matches rSoftMax.forward)
# ----------------------------------------------------------------------------

def rsoftmax(x, radix, cardinality):
    """Pallas implementation of rSoftMax.forward.

    x: (B, C, H, W) array (NCHW, like PyTorch).
    Returns:
      radix > 1 : (B, C*H*W) array (radix-major flatten, as in PyTorch)
      radix == 1: sigmoid(x) with the original NCHW shape
    """
    B = x.shape[0]
    M = 1
    for d in x.shape[1:]:
        M *= d

    x2 = x.reshape(B, M)                           # free contiguous reshape, no transpose
    itemsize = x.dtype.itemsize
    b_tile = _pick_batch_tile(B, M, itemsize)
    grid = (pl.cdiv(B, b_tile),)

    block_bytes = b_tile * M * itemsize
    vmem_limit = int(min(32 << 20, max(16 << 20, 4 * block_bytes + (2 << 20))))
    cparams = pltpu.CompilerParams(
        dimension_semantics=("parallel",),
        vmem_limit_bytes=vmem_limit,
    )
    in_spec = pl.BlockSpec((b_tile, M), lambda i: (i, 0))
    out_spec = pl.BlockSpec((b_tile, M), lambda i: (i, 0))
    bytes_accessed = 2 * B * M * itemsize

    if radix > 1:
        assert M % (cardinality * radix) == 0, (M, cardinality, radix)
        r = M // (cardinality * radix)
        row_chunk = _pick_row_chunk(b_tile, r, live_arrays=2 * radix + 2)
        kernel = partial(_rsoftmax_kernel, radix=radix, cardinality=cardinality,
                         r=r, row_chunk=row_chunk)
        cost = pl.CostEstimate(flops=6 * B * M, transcendentals=B * M,
                               bytes_accessed=bytes_accessed)
        out = pl.pallas_call(
            kernel,
            out_shape=jax.ShapeDtypeStruct((B, M), x.dtype),
            grid=grid,
            in_specs=[in_spec],
            out_specs=out_spec,
            compiler_params=cparams,
            cost_estimate=cost,
        )(x2)
        return out                                  # already the permuted (B, C*H*W) flatten
    else:
        row_chunk = _pick_row_chunk(b_tile, M, live_arrays=3)
        kernel = partial(_sigmoid_kernel, row_chunk=row_chunk)
        cost = pl.CostEstimate(flops=4 * B * M, transcendentals=B * M,
                               bytes_accessed=bytes_accessed)
        out = pl.pallas_call(
            kernel,
            out_shape=jax.ShapeDtypeStruct((B, M), x.dtype),
            grid=grid,
            in_specs=[in_spec],
            out_specs=out_spec,
            compiler_params=cparams,
            cost_estimate=cost,
        )(x2)
        return out.reshape(x.shape)


# ----------------------------------------------------------------------------
# Reference + tests
# ----------------------------------------------------------------------------

def _reference_rsoftmax(x, radix, cardinality):
    batch = x.shape[0]
    if radix > 1:
        xr = x.reshape(batch, cardinality, radix, -1)
        xr = jnp.transpose(xr, (0, 2, 1, 3))
        xr = jax.nn.softmax(xr.astype(jnp.float32), axis=1).astype(x.dtype)
        return xr.reshape(batch, -1)
    return jax.nn.sigmoid(x)


if __name__ == "__main__":
    key = jax.random.PRNGKey(0)
    k1, k2, k3, k4 = jax.random.split(key, 4)

    # 1) SplAtConv2d-style: radix=2, cardinality=2, C = card*radix*r = 16
    radix, cardinality = 2, 2
    B, C, H, W = 2, 16, 1, 1
    x = jax.random.normal(k1, (B, C, H, W), dtype=jnp.float32)
    out = jax.block_until_ready(rsoftmax(x, radix, cardinality))
    ref = _reference_rsoftmax(x, radix, cardinality)
    assert out.shape == (B, C * H * W), out.shape
    assert jnp.allclose(out, ref, atol=1e-5, rtol=1e-5), "radix>1 (card=2) mismatch"

    # 2) ResNeSt-style: radix=2, cardinality=1, lane-dense rows (M = 128)
    radix2, card2 = 2, 1
    B2, C2 = 8, 128
    x2 = jax.random.normal(k2, (B2, C2, 1, 1), dtype=jnp.float32)
    out2 = jax.block_until_ready(rsoftmax(x2, radix2, card2))
    ref2 = _reference_rsoftmax(x2, radix2, card2)
    assert out2.shape == (B2, C2), out2.shape
    assert jnp.allclose(out2, ref2, atol=1e-5, rtol=1e-5), "radix>1 (card=1) mismatch"

    # 3) radix == 1 branch: elementwise sigmoid, original NCHW shape preserved
    x3 = jax.random.normal(k3, (2, 8, 1, 1), dtype=jnp.float32)
    out3 = jax.block_until_ready(rsoftmax(x3, 1, 1))
    ref3 = _reference_rsoftmax(x3, 1, 1)
    assert out3.shape == x3.shape
    assert jnp.allclose(out3, ref3, atol=1e-5, rtol=1e-5), "radix==1 mismatch"

    # 4) Larger batch: multi-step parallel grid (megacore), partial last block,
    #    and in-kernel row-chunked streaming (pl.loop path).
    radix4, card4 = 2, 2
    B4, C4 = 136, 64
    x4 = jax.random.normal(k4, (B4, C4, 1, 1), dtype=jnp.float32)
    out4 = jax.block_until_ready(rsoftmax(x4, radix4, card4))
    ref4 = _reference_rsoftmax(x4, radix4, card4)
    assert out4.shape == (B4, C4), out4.shape
    assert jnp.allclose(out4, ref4, atol=1e-5, rtol=1e-5), "radix>1 (large B) mismatch"

    print("KERNEL_OK")
</pallas_src>

<mosaic_0001>
module attributes {stable_mosaic.version = 11 : i64} {
  func.func @_rsoftmax_kernel(%arg0: i32, %arg1: memref<2x16xf32, #tpu.memory_space<vmem>>, %arg2: memref<2x16xf32, #tpu.memory_space<vmem>>) attributes {dimension_semantics = [#tpu.dimension_semantics<parallel>], iteration_bounds = array<i64: 1>, scalar_prefetch = 0 : i64, scratch_operands = 0 : i64, tpu.core_type = #tpu.core_type<tc>, window_params = [{transform_indices = @transform_0, window_bounds = array<i64: 2, 16>}, {transform_indices = @transform_1, window_bounds = array<i64: 2, 16>}]} {
    %c0 = arith.constant 0 : index
    %c0_0 = arith.constant 0 : index
    %0 = vector.load %arg1[%c0, %c0_0] : memref<2x16xf32, #tpu.memory_space<vmem>>, vector<2x4xf32>
    %c0_1 = arith.constant 0 : index
    %c4 = arith.constant 4 : index
    %1 = vector.load %arg1[%c0_1, %c4] : memref<2x16xf32, #tpu.memory_space<vmem>>, vector<2x4xf32>
    %2 = arith.maximumf %0, %1 : vector<2x4xf32>
    %3 = arith.subf %0, %2 : vector<2x4xf32>
    %4 = math.exp %3 : vector<2x4xf32>
    %5 = arith.subf %1, %2 : vector<2x4xf32>
    %6 = math.exp %5 : vector<2x4xf32>
    %7 = arith.addf %4, %6 : vector<2x4xf32>
    %cst = arith.constant 1.000000e+00 : f32
    %8 = vector.broadcast %cst : f32 to vector<2x4xf32>
    %9 = arith.divf %8, %7 : vector<2x4xf32>
    %10 = arith.mulf %4, %9 : vector<2x4xf32>
    %c0_2 = arith.constant 0 : index
    %c0_3 = arith.constant 0 : index
    %11 = vector.load %arg2[%c0_2, %c0_3] : memref<2x16xf32, #tpu.memory_space<vmem>>, vector<2x4xf32>
    tpu.vector_store %arg2[%c0_2, %c0_3], %10 {strides = array<i32>} : memref<2x16xf32, #tpu.memory_space<vmem>>, vector<2x4xf32>,
    %12 = arith.mulf %6, %9 : vector<2x4xf32>
    %c0_4 = arith.constant 0 : index
    %c8 = arith.constant 8 : index
    %13 = vector.load %arg2[%c0_4, %c8] : memref<2x16xf32, #tpu.memory_space<vmem>>, vector<2x4xf32>
    tpu.vector_store %arg2[%c0_4, %c8], %12 {strides = array<i32>} : memref<2x16xf32, #tpu.memory_space<vmem>>, vector<2x4xf32>,
    %c0_5 = arith.constant 0 : index
    %c8_6 = arith.constant 8 : index
    %14 = vector.load %arg1[%c0_5, %c8_6] : memref<2x16xf32, #tpu.memory_space<vmem>>, vector<2x4xf32>
    %c0_7 = arith.constant 0 : index
    %c12 = arith.constant 12 : index
    %15 = vector.load %arg1[%c0_7, %c12] : memref<2x16xf32, #tpu.memory_space<vmem>>, vector<2x4xf32>
    %16 = arith.maximumf %14, %15 : vector<2x4xf32>
    %17 = arith.subf %14, %16 : vector<2x4xf32>
    %18 = math.exp %17 : vector<2x4xf32>
    %19 = arith.subf %15, %16 : vector<2x4xf32>
    %20 = math.exp %19 : vector<2x4xf32>
    %21 = arith.addf %18, %20 : vector<2x4xf32>
    %cst_8 = arith.constant 1.000000e+00 : f32
    %22 = vector.broadcast %cst_8 : f32 to vector<2x4xf32>
    %23 = arith.divf %22, %21 : vector<2x4xf32>
    %24 = arith.mulf %18, %23 : vector<2x4xf32>
    %c0_9 = arith.constant 0 : index
    %c4_10 = arith.constant 4 : index
    %25 = vector.load %arg2[%c0_9, %c4_10] : memref<2x16xf32, #tpu.memory_space<vmem>>, vector<2x4xf32>
    tpu.vector_store %arg2[%c0_9, %c4_10], %24 {strides = array<i32>} : memref<2x16xf32, #tpu.memory_space<vmem>>, vector<2x4xf32>,
    %26 = arith.mulf %20, %23 : vector<2x4xf32>
    %c0_11 = arith.constant 0 : index
    %c12_12 = arith.constant 12 : index
    %27 = vector.load %arg2[%c0_11, %c12_12] : memref<2x16xf32, #tpu.memory_space<vmem>>, vector<2x4xf32>
    tpu.vector_store %arg2[%c0_11, %c12_12], %26 {strides = array<i32>} : memref<2x16xf32, #tpu.memory_space<vmem>>, vector<2x4xf32>,
    return
  }
  func.func @transform_0(%arg0: i32) -> (i32, i32) {
    %c0_i32 = arith.constant 0 : i32
    %c0_i32_0 = arith.constant 0 : i32
    return %arg0, %c0_i32 : i32, i32
  }
  func.func @transform_1(%arg0: i32) -> (i32, i32) {
    %c0_i32 = arith.constant 0 : i32
    %c0_i32_0 = arith.constant 0 : i32
    return %arg0, %c0_i32 : i32, i32
  }
}

</mosaic_0001>

<bundles_post_ra>
// kernel: tpu_custom_call.1
= control target key start
LH: loop header
LB: loop body
LE: loop exit
PB: predicated region body
PF: predicated region fallthrough
CT: control target
= control target key end

     0   :  { %6 = vsyncpa [#allocation3], 0  ;;  %s222_s0 = inlined_call_operand.hbm [shape: f32[2,16], index: 0, kind: input, shape index: {}]   ;;  %s223_s1 = inlined_call_operand.hbm [shape: f32[2,16], index: 1, kind: output, shape index: {}]  }
   0x1   :  { %7 = vsyncpa [#allocation4], 0  ;;  %s174_s6 = smov [#allocation2]   ;;  %s126_s10 = scalar_lea.hbm %s222_s0, 32 }
   0x2   :  { %s14_s7 = sshll.u32 %s174_s6, 4  ;;  %p127_p0 = scmp.ne.s32.totalorder %s222_s0, %s126_s10  ;;  %s15_s7 = int_to_ptr.vmem [resolvable:$true] %s14_s7 }
   0x3   :  { %p130_p1 = scmp.lt.u32.totalorder %s126_s10, %s222_s0 }
   0x5   :  { %p132_p2 = pnand %p130_p1, %p127_p0 }
   0x7   :  { %135 = shalt.err (!%p132_p2)
}
   0x8   :  { %s136_s15 = scalar_lea.vmem %s15_s7, 32  ;;  %p141_p4 = scmp.lt.s32.totalorder %s15_s7, %s15_s7 }
   0x9   :  { %p137_p3 = scmp.ne.s32.totalorder %s15_s7, %s136_s15  ;;  %p142_p5 = scmp.lt.s32.totalorder %s136_s15, %s136_s15 }
   0xb   :  { %p143_p6 = por %p142_p5, %p141_p4 }
   0xd   :  { %p144_p7 = pnand %p143_p6, %p137_p3 }
   0xf   :  { %147 = shalt.err (!%p144_p7)
}
  0x10   :  { %17 = dma.hbm_to_vmem [thread:$0]  %s222_s0, 32, %s15_s7, [#allocation3]  }
  0x11   :  { %170 = dma.done.wait [#allocation3], 32  }
  0x12   :  { %171 = vsyncadd [#allocation3], 4294967264  ;;  %v21_v0 = vld [vmem:[#allocation2] sm:$0x3]  ;;  %s175_s18 = smov 124   ;;  %s176_s19 = smov 4  }
  0x13   :  { %23 = vrot.lane.b32.xlu0 %v21_v0, %s175_s18  ;;  %v58_v1 = vld [vmem:[#allocation2] sm:$0x3]  ;;  %vm45_vm0 = vcmask 25600   ;;  %vm56_vm1 = vcmask 91200   ;;  %s177_s0 = smov [#allocation5]   ;;  %vm86_vm2 = vcmask 58400  }
  0x14   :  { %s101_s20 = sshll.u32 %s177_s0, 4  ;;  %vm93_vm3 = vcmask 124000   ;;  %s102_s20 = int_to_ptr.vmem [resolvable:$true] %s101_s20 }
  0x15   :  { %s148_s21 = scalar_lea.vmem %s102_s20, 32  ;;  %p153_p9 = scmp.lt.s32.totalorder %s102_s20, %s102_s20 }
  0x16   :  { %p149_p8 = scmp.ne.s32.totalorder %s102_s20, %s148_s21  ;;  %p154_p10 = scmp.lt.s32.totalorder %s148_s21, %s148_s21 }
  0x17   :  { %60 = vrot.lane.b32.xlu0 %v58_v1, %s175_s18 }
  0x18   :  { %p155_p11 = por %p154_p10, %p153_p9 }
  0x1a   :  { %p156_p12 = pnand %p155_p11, %p149_p8 }
  0x85   :  { %v24_v2 = vpop.permute.xlu0 %23 }
  0x86   :  { %v26_v3 = vmax.f32 %v21_v0, %v24_v2 }
  0x88   :  { %31 = vrot.lane.b32.xlu1 %v26_v3, %s176_s19  ;;  %v27_v14 = vsub.f32 %v21_v0, %v26_v3 }
  0x89   :  { %v61_v4 = vpop.permute.xlu0 %60 }
  0x8a   :  { %v63_v5 = vmax.f32 %v58_v1, %v61_v4  ;;  %v28_v15 = vmul.f32 1.442695, %v27_v14 }
  0x8c   :  { %68 = vrot.lane.b32.xlu1 %v63_v5, %s176_s19  ;;  %v64_v16 = vsub.f32 %v58_v1, %v63_v5 }
  0x8e   :  { %v65_v17 = vmul.f32 1.442695, %v64_v16 }
  0xfa   :  { %v32_v6 = vpop.permute.xlu1 %31 }
  0xfb   :  { %v34_v7 = vsub.f32 %v21_v0, %v32_v6 }
  0xfd   :  { %v35_v8 = vmul.f32 1.442695, %v34_v7 }
  0xfe   :  { %v69_v9 = vpop.permute.xlu1 %68 }
  0xff   :  { %114 = vpow2.f32 %v35_v8  ;;  %v71_v10 = vsub.f32 %v58_v1, %v69_v9 }
 0x101   :  { %v72_v11 = vmul.f32 1.442695, %v71_v10 }
 0x103   :  { %116 = vpow2.f32 %v72_v11 }
 0x104   :  { %118 = vpow2.f32 %v28_v15 }
 0x105   :  { %120 = vpow2.f32 %v65_v17 }
 0x109   :  { %v115_v12 = vpop.eup %114 }
 0x10a   :  { %38 = vrot.lane.b32.xlu0 %v115_v12, %s175_s18 }
 0x10d   :  { %v117_v13 = vpop.eup %116 }
 0x10e   :  { %75 = vrot.lane.b32.xlu1 %v117_v13, %s175_s18  ;;  %v119_v18 = vpop.eup %118 }
 0x10f   :  { %v121_v21 = vpop.eup %120 }
 0x17c   :  { %v39_v19 = vpop.permute.xlu0 %38 }
 0x17d   :  { %v41_v20 = vadd.f32 %v119_v18, %v39_v19 }
 0x17f   :  { %122 = vrcp.f32 %v41_v20 }
 0x180   :  { %v76_v22 = vpop.permute.xlu1 %75 }
 0x181   :  { %v78_v23 = vadd.f32 %v121_v21, %v76_v22 }
 0x183   :  { %124 = vrcp.f32 %v78_v23 }
 0x189   :  { %v123_v24 = vpop.eup %122 }
 0x18a   :  { %48 = vrot.lane.b32.xlu0 %v123_v24, %s176_s19  ;;  %v44_v25 = vmul.f32 %v123_v24, %v119_v18 }
 0x18c   :  { %46 = vst.msk [vmem:[#allocation5] sm:$0x3] %vm45_vm0, %v44_v25 }
 0x18d   :  { %v125_v26 = vpop.eup %124 }
 0x18e   :  { %89 = vrot.lane.b32.xlu0 %v125_v26, %s176_s19  ;;  %v81_v27 = vmul.f32 %v125_v26, %v121_v21 }
 0x1fc   :  { %v49_v28 = vpop.permute.xlu0 %48 }
 0x1fd   :  { %v51_v29 = vmul.f32 %v115_v12, %v49_v28 }
 0x1ff   :  { %53 = vrot.lane.b32.xlu1 %v51_v29, %s176_s19 }
 0x200   :  { %v90_v31 = vpop.permute.xlu0 %89 }
 0x201   :  { %v92_v32 = vmul.f32 %v117_v13, %v90_v31 }
 0x203   :  { %83 = vrot.lane.b32.xlu1 %v81_v27, %s175_s18 }
 0x271   :  { %v54_v30 = vpop.permute.xlu1 %53 }
 0x272   :  { %57 = vst.msk [vmem:[#allocation5] sm:$0x3] %vm56_vm1, %v54_v30 }
 0x275   :  { %v84_v33 = vpop.permute.xlu1 %83 }
 0x276   :  { %87 = vst.msk [vmem:[#allocation5] sm:$0x3] %vm86_vm2, %v84_v33 }
 0x277   :  { %94 = vst.msk [vmem:[#allocation5] sm:$0x3] %vm93_vm3, %v92_v32 }
 0x278   :  { %159 = shalt.err (!%p156_p12)
}
 0x279   :  { %s160_s24 = scalar_lea.hbm %s223_s1, 32 }
 0x27a   :  { %p161_p13 = scmp.ne.s32.totalorder %s223_s1, %s160_s24  ;;  %p164_p0 = scmp.lt.u32.totalorder %s160_s24, %s223_s1 }
 0x27c   :  { %p166_p1 = pnand %p164_p0, %p161_p13 }
 0x27e   :  { %169 = shalt.err (!%p166_p1)
}
 0x27f   :  { %104 = dma.vmem_to_hbm [thread:$0]  %s102_s20, 32, %s223_s1, [#allocation4]  }
 0x280   :  { %172 = dma.done.wait [#allocation4], 32  }
 0x281   :  { %173 = vsyncadd [#allocation4], 4294967264 }
 0x282   :  { %108 = vsyncpa [#allocation3], 1 }
 0x283   :  { %109 = vsyncpa [#allocation4], 1 }

</bundles_post_ra>
